<compile_context>
chip_gen: v7x
topology: tpu7x:2x2x1
jax: 0.10.0
libtpu: 0.0.40
codegen_flags: <defaults>
</compile_context>

<pallas_src>
import jax
import jax.numpy as jnp
from jax.experimental import pallas as pl
from jax.experimental.pallas import tpu as pltpu


def lstm_kernel(xg_ref, len_ref, wh_ref, wlin_ref, blin_ref, out_ref):
    # xg_ref:   (T, B, 4H) bf16  precomputed x @ Wx_fused + (b_ih + b_hh)
    # len_ref:  (B, 1)     int32 sequence lengths
    # wh_ref:   (H, 4H)    bf16  fused recurrent weight (gate order i, f, g, o)
    # wlin_ref: (1, H)     f32   classification-head weight row
    # blin_ref: (1, 1)     f32   classification-head bias
    # out_ref:  (B, 1)     f32   sigmoid(logit)
    T, B, G = xg_ref.shape
    H = wh_ref.shape[0]

    # Hoisted loads: one bulk xg load + upcast instead of T dynamic
    # first-axis indexed loads sitting on the serial chain.
    xg_all = xg_ref[...].astype(jnp.float32)          # (T, B, 4H) f32
    wh_bf = wh_ref[...]                               # (H, 4H) bf16, resident
    lens = len_ref[...]                               # (B, 1) int32

    # h/c live in vregs; cell math stays f32 (v5e-friendly).
    h = jnp.zeros((B, H), jnp.float32)
    c = jnp.zeros((B, H), jnp.float32)

    # T is static and tiny -> full static unroll (LLO scheduling visibility,
    # static xg slices).
    for t in range(T):
        # Single bf16 MXU pass per step, f32 accumulation.
        gates = xg_all[t] + jnp.dot(h.astype(jnp.bfloat16), wh_bf,
                                    preferred_element_type=jnp.float32)
        # 2 full-width EUP passes over the lane-dense (B, 4H) block
        # (+ tanh(c_new) below) = 3 transcendental pushes per step (was 5).
        sig = jax.nn.sigmoid(gates)
        th = jnp.tanh(gates)
        i_g = sig[:, 0 * H:1 * H]
        f_g = sig[:, 1 * H:2 * H]
        o_g = sig[:, 3 * H:4 * H]
        g_g = th[:, 2 * H:3 * H]
        c_new = f_g * c + i_g * g_g
        h_new = o_g * jnp.tanh(c_new)
        mask = t < lens                               # (B, 1): packed-seq freeze
        h = jnp.where(mask, h_new, h)
        c = jnp.where(mask, c_new, c)

    # Head: VPU multiply + lane reduce instead of an N=1 MXU matmul.
    logit = jnp.sum(h * wlin_ref[...], axis=-1, keepdims=True) + blin_ref[...]
    out_ref[...] = jax.nn.sigmoid(logit)
    # TODO(synk): for large B, pad B to a sublane multiple and write logits
    # lane-dense as (1, B_tile); (B, 1) masked stores are fine at this size.


def lstm_forward(tokens, lengths, params):
    emb, wx, wh, b, wlin, blin = (params[k] for k in
                                  ("emb", "wx", "wh", "b", "wlin", "blin"))
    B, T = tokens.shape
    H = wh.shape[0]
    G = 4 * H

    x = emb[tokens]                                  # (B, T, E) embedding lookup
    # nn.Dropout(0.3) is identity in eval mode.
    # TODO(synk): train-mode dropout (random mask + 1/(1-p) scaling) omitted.

    # Hoisted input projection; the time-major transpose is fused into the
    # einsum output layout (no separate XLA transpose op).  Streamed to the
    # kernel as bf16 to halve the only O(T*B*4H) HBM->VMEM DMA.
    xg_tbg = (jnp.einsum("bte,eg->tbg", x, wx,
                         preferred_element_type=jnp.float32) + b
              ).astype(jnp.bfloat16)                 # (T, B, 4H) time-major
    lens = lengths.reshape(B, 1).astype(jnp.int32)
    wh_bf = wh.astype(jnp.bfloat16)                  # bf16 MXU operand

    grid_spec = pltpu.PrefetchScalarGridSpec(
        num_scalar_prefetch=0,
        grid=(1,),
        in_specs=[
            pl.BlockSpec((T, B, G), lambda i: (0, 0, 0)),   # xg (lane-dense 4H)
            pl.BlockSpec((B, 1), lambda i: (0, 0)),         # lengths
            pl.BlockSpec((H, G), lambda i: (0, 0)),         # fused W_hh^T (bf16)
            pl.BlockSpec((1, H), lambda i: (0, 0)),         # linear weight row
            pl.BlockSpec((1, 1), lambda i: (0, 0)),         # linear bias
        ],
        out_specs=pl.BlockSpec((B, 1), lambda i: (0, 0)),
    )
    # TODO(synk): for production T/B, tile T through the grid ("arbitrary",
    # h/c in scratch carried across the T axis, wh resident via constant
    # index_map) and add a leading "parallel" B-tile axis (>=2 blocks so the
    # second v7x TensorCore is used); size the bf16 xg time-tile against
    # v7x's 64 MiB VMEM (double-buffered inputs) and set
    # pltpu.CompilerParams(vmem_limit_bytes=...) accordingly.
    return pl.pallas_call(
        lstm_kernel,
        out_shape=jax.ShapeDtypeStruct((B, 1), jnp.float32),
        grid_spec=grid_spec,
        compiler_params=pltpu.CompilerParams(
            dimension_semantics=("arbitrary",)),
    )(xg_tbg, lens, wh_bf, wlin, blin)


def init_params(key, vocab_size, embedding_dim, hidden_dim):
    E, H = embedding_dim, hidden_dim
    ks = jax.random.split(key, 6)
    emb = 0.1 * jax.random.normal(ks[0], (vocab_size, E), jnp.float32)
    emb = emb.at[0].set(0.0)                         # padding_idx=0
    bound = 1.0 / (H ** 0.5)
    # PyTorch-packed weights: (4H, *) with gate blocks in order i, f, g, o.
    w_ih = jax.random.uniform(ks[1], (4 * H, E), jnp.float32, -bound, bound)
    w_hh = jax.random.uniform(ks[2], (4 * H, H), jnp.float32, -bound, bound)
    b_ih = jax.random.uniform(ks[3], (4 * H,), jnp.float32, -bound, bound)
    b_hh = jax.random.uniform(ks[4], (4 * H,), jnp.float32, -bound, bound)
    w_lin = jax.random.uniform(ks[5], (1, H), jnp.float32, -bound, bound)
    b_lin = jnp.zeros((1,), jnp.float32)
    # Fused, transposed layouts: columns of wx/wh are [i | f | g | o] blocks.
    wx = w_ih.T                                      # (E, 4H)
    wh = w_hh.T                                      # (H, 4H)
    b = (b_ih + b_hh).reshape(1, 4 * H)              # (1, 4H)
    return dict(emb=emb, wx=wx, wh=wh, b=b,
                wlin=w_lin, blin=b_lin.reshape(1, 1))


def reference_forward(tokens, lengths, p):
    """Pure-JAX reference with the same packed-LSTM semantics.

    Mirrors the kernel's bf16 quantization of xg and of the recurrent-matmul
    operands (h, W_hh) so the comparison tolerance stays tight; vs. a pure-f32
    torch forward the deviation is O(1e-2) from the bf16 MXU operands.
    """
    x = p["emb"][tokens]                             # (B, T, E)
    B, T, _ = x.shape
    H = p["wh"].shape[0]
    xg = (jnp.einsum("bte,eg->btg", x, p["wx"],
                     preferred_element_type=jnp.float32) + p["b"])
    xg = xg.astype(jnp.bfloat16).astype(jnp.float32)           # (B, T, 4H)
    wh = p["wh"].astype(jnp.bfloat16).astype(jnp.float32)      # (H, 4H)
    h = jnp.zeros((B, H), jnp.float32)
    c = jnp.zeros((B, H), jnp.float32)
    for t in range(T):
        hb = h.astype(jnp.bfloat16).astype(jnp.float32)
        g = xg[:, t, :] + hb @ wh                                # (B, 4H)
        i = jax.nn.sigmoid(g[:, 0 * H:1 * H])
        f = jax.nn.sigmoid(g[:, 1 * H:2 * H])
        gg = jnp.tanh(g[:, 2 * H:3 * H])
        o = jax.nn.sigmoid(g[:, 3 * H:4 * H])
        c_new = f * c + i * gg
        h_new = o * jnp.tanh(c_new)
        m = (t < lengths).reshape(B, 1)
        h = jnp.where(m, h_new, h)
        c = jnp.where(m, c_new, c)
    logit = jnp.sum(h * p["wlin"], axis=-1, keepdims=True) + p["blin"]
    return jax.nn.sigmoid(logit)


if __name__ == "__main__":
    vocab_size, embedding_dim, hidden_dim = 50, 16, 32
    B, T = 4, 8

    key = jax.random.PRNGKey(0)
    k_params, k_tok = jax.random.split(key)
    params = init_params(k_params, vocab_size, embedding_dim, hidden_dim)

    lengths = jnp.array([8, 5, 3, 6], dtype=jnp.int32)          # per-seq lengths
    tokens = jax.random.randint(k_tok, (B, T), 1, vocab_size, dtype=jnp.int32)
    pad_mask = jnp.arange(T)[None, :] < lengths[:, None]
    tokens = jnp.where(pad_mask, tokens, 0)                      # 0 = padding token

    out = lstm_forward(tokens, lengths, params)
    out = jax.block_until_ready(out)

    ref = reference_forward(tokens, lengths, params)
    assert out.shape == (B, 1)
    assert jnp.allclose(out, ref, atol=5e-3, rtol=5e-3), (out, ref)

    print("KERNEL_OK")
</pallas_src>

<mosaic_0001>
module attributes {stable_mosaic.version = 11 : i64} {
  func.func @lstm_kernel(%arg0: i32, %arg1: memref<8x4x128xbf16, #tpu.memory_space<vmem>>, %arg2: memref<4x1xi32, #tpu.memory_space<vmem>>, %arg3: memref<32x128xbf16, #tpu.memory_space<vmem>>, %arg4: memref<1x32xf32, #tpu.memory_space<vmem>>, %arg5: memref<1x1xf32, #tpu.memory_space<vmem>>, %arg6: memref<4x1xf32, #tpu.memory_space<vmem>>) attributes {dimension_semantics = [#tpu.dimension_semantics<arbitrary>], iteration_bounds = array<i64: 1>, scalar_prefetch = 0 : i64, scratch_operands = 0 : i64, tpu.core_type = #tpu.core_type<tc>, window_params = [{pipeline_mode = #tpu.pipeline_mode<synchronous>, transform_indices = @transform_0, window_bounds = array<i64: 8, 4, 128>}, {pipeline_mode = #tpu.pipeline_mode<synchronous>, transform_indices = @transform_1, window_bounds = array<i64: 4, 1>}, {pipeline_mode = #tpu.pipeline_mode<synchronous>, transform_indices = @transform_2, window_bounds = array<i64: 32, 128>}, {pipeline_mode = #tpu.pipeline_mode<synchronous>, transform_indices = @transform_3, window_bounds = array<i64: 1, 32>}, {pipeline_mode = #tpu.pipeline_mode<synchronous>, transform_indices = @transform_4, window_bounds = array<i64: 1, 1>}, {pipeline_mode = #tpu.pipeline_mode<synchronous>, transform_indices = @transform_5, window_bounds = array<i64: 4, 1>}]} {
    %c0 = arith.constant 0 : index
    %c0_0 = arith.constant 0 : index
    %c0_1 = arith.constant 0 : index
    %0 = vector.load %arg1[%c0, %c0_0, %c0_1] : memref<8x4x128xbf16, #tpu.memory_space<vmem>>, vector<8x4x128xbf16>
    %1 = arith.extf %0 : vector<8x4x128xbf16> to vector<8x4x128xf32>
    %c0_2 = arith.constant 0 : index
    %c0_3 = arith.constant 0 : index
    %2 = vector.load %arg3[%c0_2, %c0_3] : memref<32x128xbf16, #tpu.memory_space<vmem>>, vector<32x128xbf16>
    %c0_4 = arith.constant 0 : index
    %c0_5 = arith.constant 0 : index
    %3 = vector.load %arg2[%c0_4, %c0_5] : memref<4x1xi32, #tpu.memory_space<vmem>>, vector<4x1xi32>
    %cst = arith.constant 0.000000e+00 : f32
    %4 = vector.broadcast %cst : f32 to vector<4x32xf32>
    %cst_6 = arith.constant 0.000000e+00 : f32
    %5 = vector.broadcast %cst_6 : f32 to vector<4x32xf32>
    %6 = vector.extract_strided_slice %1 {offsets = [0, 0, 0], sizes = [1, 4, 128], strides = [1, 1, 1]} : vector<8x4x128xf32> to vector<1x4x128xf32>
    %7 = vector.shape_cast %6 : vector<1x4x128xf32> to vector<4x128xf32>
    %8 = arith.truncf %4 : vector<4x32xf32> to vector<4x32xbf16>
    %cst_7 = arith.constant dense<0.000000e+00> : vector<4x128xf32>
    %9 = tpu.matmul %8, %2, %cst_7 {dimension_numbers = #tpu.dot_dimension_numbers<[1], [0], [0], [1], [0, 0, 1, 1], [], []>} : vector<4x32xbf16>, vector<32x128xbf16>, vector<4x128xf32> -> vector<4x128xf32>
    %10 = arith.addf %7, %9 : vector<4x128xf32>
    %11 = arith.negf %10 : vector<4x128xf32>
    %12 = math.exp %11 : vector<4x128xf32>
    %cst_8 = arith.constant 1.000000e+00 : f32
    %13 = vector.broadcast %cst_8 : f32 to vector<4x128xf32>
    %14 = arith.addf %13, %12 : vector<4x128xf32>
    %15 = arith.divf %13, %14 : vector<4x128xf32>
    %16 = math.tanh %10 : vector<4x128xf32>
    %17 = vector.extract_strided_slice %15 {offsets = [0, 0], sizes = [4, 32], strides = [1, 1]} : vector<4x128xf32> to vector<4x32xf32>
    %18 = vector.extract_strided_slice %15 {offsets = [0, 32], sizes = [4, 32], strides = [1, 1]} : vector<4x128xf32> to vector<4x32xf32>
    %19 = vector.extract_strided_slice %15 {offsets = [0, 96], sizes = [4, 32], strides = [1, 1]} : vector<4x128xf32> to vector<4x32xf32>
    %20 = vector.extract_strided_slice %16 {offsets = [0, 64], sizes = [4, 32], strides = [1, 1]} : vector<4x128xf32> to vector<4x32xf32>
    %21 = arith.mulf %18, %5 : vector<4x32xf32>
    %22 = arith.mulf %17, %20 : vector<4x32xf32>
    %23 = arith.addf %21, %22 : vector<4x32xf32>
    %24 = math.tanh %23 : vector<4x32xf32>
    %25 = arith.mulf %19, %24 : vector<4x32xf32>
    %c0_i32 = arith.constant 0 : i32
    %26 = vector.broadcast %c0_i32 : i32 to vector<4x1xi32>
    %27 = arith.cmpi sgt, %3, %26 : vector<4x1xi32>
    %28 = vector.shape_cast %27 : vector<4x1xi1> to vector<4x1xi1>
    %29 = vector.broadcast %28 : vector<4x1xi1> to vector<4x32xi1>
    %30 = arith.select %29, %25, %4 : vector<4x32xi1>, vector<4x32xf32>
    %31 = vector.shape_cast %27 : vector<4x1xi1> to vector<4x1xi1>
    %32 = vector.broadcast %31 : vector<4x1xi1> to vector<4x32xi1>
    %33 = arith.select %32, %23, %5 : vector<4x32xi1>, vector<4x32xf32>
    %34 = vector.extract_strided_slice %1 {offsets = [1, 0, 0], sizes = [1, 4, 128], strides = [1, 1, 1]} : vector<8x4x128xf32> to vector<1x4x128xf32>
    %35 = vector.shape_cast %34 : vector<1x4x128xf32> to vector<4x128xf32>
    %36 = arith.truncf %30 : vector<4x32xf32> to vector<4x32xbf16>
    %cst_9 = arith.constant dense<0.000000e+00> : vector<4x128xf32>
    %37 = tpu.matmul %36, %2, %cst_9 {dimension_numbers = #tpu.dot_dimension_numbers<[1], [0], [0], [1], [0, 0, 1, 1], [], []>} : vector<4x32xbf16>, vector<32x128xbf16>, vector<4x128xf32> -> vector<4x128xf32>
    %38 = arith.addf %35, %37 : vector<4x128xf32>
    %39 = arith.negf %38 : vector<4x128xf32>
    %40 = math.exp %39 : vector<4x128xf32>
    %cst_10 = arith.constant 1.000000e+00 : f32
    %41 = vector.broadcast %cst_10 : f32 to vector<4x128xf32>
    %42 = arith.addf %41, %40 : vector<4x128xf32>
    %43 = arith.divf %41, %42 : vector<4x128xf32>
    %44 = math.tanh %38 : vector<4x128xf32>
    %45 = vector.extract_strided_slice %43 {offsets = [0, 0], sizes = [4, 32], strides = [1, 1]} : vector<4x128xf32> to vector<4x32xf32>
    %46 = vector.extract_strided_slice %43 {offsets = [0, 32], sizes = [4, 32], strides = [1, 1]} : vector<4x128xf32> to vector<4x32xf32>
    %47 = vector.extract_strided_slice %43 {offsets = [0, 96], sizes = [4, 32], strides = [1, 1]} : vector<4x128xf32> to vector<4x32xf32>
    %48 = vector.extract_strided_slice %44 {offsets = [0, 64], sizes = [4, 32], strides = [1, 1]} : vector<4x128xf32> to vector<4x32xf32>
    %49 = arith.mulf %46, %33 : vector<4x32xf32>
    %50 = arith.mulf %45, %48 : vector<4x32xf32>
    %51 = arith.addf %49, %50 : vector<4x32xf32>
    %52 = math.tanh %51 : vector<4x32xf32>
    %53 = arith.mulf %47, %52 : vector<4x32xf32>
    %c1_i32 = arith.constant 1 : i32
    %54 = vector.broadcast %c1_i32 : i32 to vector<4x1xi32>
    %55 = arith.cmpi sgt, %3, %54 : vector<4x1xi32>
    %56 = vector.shape_cast %55 : vector<4x1xi1> to vector<4x1xi1>
    %57 = vector.broadcast %56 : vector<4x1xi1> to vector<4x32xi1>
    %58 = arith.select %57, %53, %30 : vector<4x32xi1>, vector<4x32xf32>
    %59 = vector.shape_cast %55 : vector<4x1xi1> to vector<4x1xi1>
    %60 = vector.broadcast %59 : vector<4x1xi1> to vector<4x32xi1>
    %61 = arith.select %60, %51, %33 : vector<4x32xi1>, vector<4x32xf32>
    %62 = vector.extract_strided_slice %1 {offsets = [2, 0, 0], sizes = [1, 4, 128], strides = [1, 1, 1]} : vector<8x4x128xf32> to vector<1x4x128xf32>
    %63 = vector.shape_cast %62 : vector<1x4x128xf32> to vector<4x128xf32>
    %64 = arith.truncf %58 : vector<4x32xf32> to vector<4x32xbf16>
    %cst_11 = arith.constant dense<0.000000e+00> : vector<4x128xf32>
    %65 = tpu.matmul %64, %2, %cst_11 {dimension_numbers = #tpu.dot_dimension_numbers<[1], [0], [0], [1], [0, 0, 1, 1], [], []>} : vector<4x32xbf16>, vector<32x128xbf16>, vector<4x128xf32> -> vector<4x128xf32>
    %66 = arith.addf %63, %65 : vector<4x128xf32>
    %67 = arith.negf %66 : vector<4x128xf32>
    %68 = math.exp %67 : vector<4x128xf32>
    %cst_12 = arith.constant 1.000000e+00 : f32
    %69 = vector.broadcast %cst_12 : f32 to vector<4x128xf32>
    %70 = arith.addf %69, %68 : vector<4x128xf32>
    %71 = arith.divf %69, %70 : vector<4x128xf32>
    %72 = math.tanh %66 : vector<4x128xf32>
    %73 = vector.extract_strided_slice %71 {offsets = [0, 0], sizes = [4, 32], strides = [1, 1]} : vector<4x128xf32> to vector<4x32xf32>
    %74 = vector.extract_strided_slice %71 {offsets = [0, 32], sizes = [4, 32], strides = [1, 1]} : vector<4x128xf32> to vector<4x32xf32>
    %75 = vector.extract_strided_slice %71 {offsets = [0, 96], sizes = [4, 32], strides = [1, 1]} : vector<4x128xf32> to vector<4x32xf32>
    %76 = vector.extract_strided_slice %72 {offsets = [0, 64], sizes = [4, 32], strides = [1, 1]} : vector<4x128xf32> to vector<4x32xf32>
    %77 = arith.mulf %74, %61 : vector<4x32xf32>
    %78 = arith.mulf %73, %76 : vector<4x32xf32>
    %79 = arith.addf %77, %78 : vector<4x32xf32>
    %80 = math.tanh %79 : vector<4x32xf32>
    %81 = arith.mulf %75, %80 : vector<4x32xf32>
    %c2_i32 = arith.constant 2 : i32
    %82 = vector.broadcast %c2_i32 : i32 to vector<4x1xi32>
    %83 = arith.cmpi sgt, %3, %82 : vector<4x1xi32>
    %84 = vector.shape_cast %83 : vector<4x1xi1> to vector<4x1xi1>
    %85 = vector.broadcast %84 : vector<4x1xi1> to vector<4x32xi1>
    %86 = arith.select %85, %81, %58 : vector<4x32xi1>, vector<4x32xf32>
    %87 = vector.shape_cast %83 : vector<4x1xi1> to vector<4x1xi1>
    %88 = vector.broadcast %87 : vector<4x1xi1> to vector<4x32xi1>
    %89 = arith.select %88, %79, %61 : vector<4x32xi1>, vector<4x32xf32>
    %90 = vector.extract_strided_slice %1 {offsets = [3, 0, 0], sizes = [1, 4, 128], strides = [1, 1, 1]} : vector<8x4x128xf32> to vector<1x4x128xf32>
    %91 = vector.shape_cast %90 : vector<1x4x128xf32> to vector<4x128xf32>
    %92 = arith.truncf %86 : vector<4x32xf32> to vector<4x32xbf16>
    %cst_13 = arith.constant dense<0.000000e+00> : vector<4x128xf32>
    %93 = tpu.matmul %92, %2, %cst_13 {dimension_numbers = #tpu.dot_dimension_numbers<[1], [0], [0], [1], [0, 0, 1, 1], [], []>} : vector<4x32xbf16>, vector<32x128xbf16>, vector<4x128xf32> -> vector<4x128xf32>
    %94 = arith.addf %91, %93 : vector<4x128xf32>
    %95 = arith.negf %94 : vector<4x128xf32>
    %96 = math.exp %95 : vector<4x128xf32>
    %cst_14 = arith.constant 1.000000e+00 : f32
    %97 = vector.broadcast %cst_14 : f32 to vector<4x128xf32>
    %98 = arith.addf %97, %96 : vector<4x128xf32>
    %99 = arith.divf %97, %98 : vector<4x128xf32>
    %100 = math.tanh %94 : vector<4x128xf32>
    %101 = vector.extract_strided_slice %99 {offsets = [0, 0], sizes = [4, 32], strides = [1, 1]} : vector<4x128xf32> to vector<4x32xf32>
    %102 = vector.extract_strided_slice %99 {offsets = [0, 32], sizes = [4, 32], strides = [1, 1]} : vector<4x128xf32> to vector<4x32xf32>
    %103 = vector.extract_strided_slice %99 {offsets = [0, 96], sizes = [4, 32], strides = [1, 1]} : vector<4x128xf32> to vector<4x32xf32>
    %104 = vector.extract_strided_slice %100 {offsets = [0, 64], sizes = [4, 32], strides = [1, 1]} : vector<4x128xf32> to vector<4x32xf32>
    %105 = arith.mulf %102, %89 : vector<4x32xf32>
    %106 = arith.mulf %101, %104 : vector<4x32xf32>
    %107 = arith.addf %105, %106 : vector<4x32xf32>
    %108 = math.tanh %107 : vector<4x32xf32>
    %109 = arith.mulf %103, %108 : vector<4x32xf32>
    %c3_i32 = arith.constant 3 : i32
    %110 = vector.broadcast %c3_i32 : i32 to vector<4x1xi32>
    %111 = arith.cmpi sgt, %3, %110 : vector<4x1xi32>
    %112 = vector.shape_cast %111 : vector<4x1xi1> to vector<4x1xi1>
    %113 = vector.broadcast %112 : vector<4x1xi1> to vector<4x32xi1>
    %114 = arith.select %113, %109, %86 : vector<4x32xi1>, vector<4x32xf32>
    %115 = vector.shape_cast %111 : vector<4x1xi1> to vector<4x1xi1>
    %116 = vector.broadcast %115 : vector<4x1xi1> to vector<4x32xi1>
    %117 = arith.select %116, %107, %89 : vector<4x32xi1>, vector<4x32xf32>
    %118 = vector.extract_strided_slice %1 {offsets = [4, 0, 0], sizes = [1, 4, 128], strides = [1, 1, 1]} : vector<8x4x128xf32> to vector<1x4x128xf32>
    %119 = vector.shape_cast %118 : vector<1x4x128xf32> to vector<4x128xf32>
    %120 = arith.truncf %114 : vector<4x32xf32> to vector<4x32xbf16>
    %cst_15 = arith.constant dense<0.000000e+00> : vector<4x128xf32>
    %121 = tpu.matmul %120, %2, %cst_15 {dimension_numbers = #tpu.dot_dimension_numbers<[1], [0], [0], [1], [0, 0, 1, 1], [], []>} : vector<4x32xbf16>, vector<32x128xbf16>, vector<4x128xf32> -> vector<4x128xf32>
    %122 = arith.addf %119, %121 : vector<4x128xf32>
    %123 = arith.negf %122 : vector<4x128xf32>
    %124 = math.exp %123 : vector<4x128xf32>
    %cst_16 = arith.constant 1.000000e+00 : f32
    %125 = vector.broadcast %cst_16 : f32 to vector<4x128xf32>
    %126 = arith.addf %125, %124 : vector<4x128xf32>
    %127 = arith.divf %125, %126 : vector<4x128xf32>
    %128 = math.tanh %122 : vector<4x128xf32>
    %129 = vector.extract_strided_slice %127 {offsets = [0, 0], sizes = [4, 32], strides = [1, 1]} : vector<4x128xf32> to vector<4x32xf32>
    %130 = vector.extract_strided_slice %127 {offsets = [0, 32], sizes = [4, 32], strides = [1, 1]} : vector<4x128xf32> to vector<4x32xf32>
    %131 = vector.extract_strided_slice %127 {offsets = [0, 96], sizes = [4, 32], strides = [1, 1]} : vector<4x128xf32> to vector<4x32xf32>
    %132 = vector.extract_strided_slice %128 {offsets = [0, 64], sizes = [4, 32], strides = [1, 1]} : vector<4x128xf32> to vector<4x32xf32>
    %133 = arith.mulf %130, %117 : vector<4x32xf32>
    %134 = arith.mulf %129, %132 : vector<4x32xf32>
    %135 = arith.addf %133, %134 : vector<4x32xf32>
    %136 = math.tanh %135 : vector<4x32xf32>
    %137 = arith.mulf %131, %136 : vector<4x32xf32>
    %c4_i32 = arith.constant 4 : i32
    %138 = vector.broadcast %c4_i32 : i32 to vector<4x1xi32>
    %139 = arith.cmpi sgt, %3, %138 : vector<4x1xi32>
    %140 = vector.shape_cast %139 : vector<4x1xi1> to vector<4x1xi1>
    %141 = vector.broadcast %140 : vector<4x1xi1> to vector<4x32xi1>
    %142 = arith.select %141, %137, %114 : vector<4x32xi1>, vector<4x32xf32>
    %143 = vector.shape_cast %139 : vector<4x1xi1> to vector<4x1xi1>
    %144 = vector.broadcast %143 : vector<4x1xi1> to vector<4x32xi1>
    %145 = arith.select %144, %135, %117 : vector<4x32xi1>, vector<4x32xf32>
    %146 = vector.extract_strided_slice %1 {offsets = [5, 0, 0], sizes = [1, 4, 128], strides = [1, 1, 1]} : vector<8x4x128xf32> to vector<1x4x128xf32>
    %147 = vector.shape_cast %146 : vector<1x4x128xf32> to vector<4x128xf32>
    %148 = arith.truncf %142 : vector<4x32xf32> to vector<4x32xbf16>
    %cst_17 = arith.constant dense<0.000000e+00> : vector<4x128xf32>
    %149 = tpu.matmul %148, %2, %cst_17 {dimension_numbers = #tpu.dot_dimension_numbers<[1], [0], [0], [1], [0, 0, 1, 1], [], []>} : vector<4x32xbf16>, vector<32x128xbf16>, vector<4x128xf32> -> vector<4x128xf32>
    %150 = arith.addf %147, %149 : vector<4x128xf32>
    %151 = arith.negf %150 : vector<4x128xf32>
    %152 = math.exp %151 : vector<4x128xf32>
    %cst_18 = arith.constant 1.000000e+00 : f32
    %153 = vector.broadcast %cst_18 : f32 to vector<4x128xf32>
    %154 = arith.addf %153, %152 : vector<4x128xf32>
    %155 = arith.divf %153, %154 : vector<4x128xf32>
    %156 = math.tanh %150 : vector<4x128xf32>
    %157 = vector.extract_strided_slice %155 {offsets = [0, 0], sizes = [4, 32], strides = [1, 1]} : vector<4x128xf32> to vector<4x32xf32>
    %158 = vector.extract_strided_slice %155 {offsets = [0, 32], sizes = [4, 32], strides = [1, 1]} : vector<4x128xf32> to vector<4x32xf32>
    %159 = vector.extract_strided_slice %155 {offsets = [0, 96], sizes = [4, 32], strides = [1, 1]} : vector<4x128xf32> to vector<4x32xf32>
    %160 = vector.extract_strided_slice %156 {offsets = [0, 64], sizes = [4, 32], strides = [1, 1]} : vector<4x128xf32> to vector<4x32xf32>
    %161 = arith.mulf %158, %145 : vector<4x32xf32>
    %162 = arith.mulf %157, %160 : vector<4x32xf32>
    %163 = arith.addf %161, %162 : vector<4x32xf32>
    %164 = math.tanh %163 : vector<4x32xf32>
    %165 = arith.mulf %159, %164 : vector<4x32xf32>
    %c5_i32 = arith.constant 5 : i32
    %166 = vector.broadcast %c5_i32 : i32 to vector<4x1xi32>
    %167 = arith.cmpi sgt, %3, %166 : vector<4x1xi32>
    %168 = vector.shape_cast %167 : vector<4x1xi1> to vector<4x1xi1>
    %169 = vector.broadcast %168 : vector<4x1xi1> to vector<4x32xi1>
    %170 = arith.select %169, %165, %142 : vector<4x32xi1>, vector<4x32xf32>
    %171 = vector.shape_cast %167 : vector<4x1xi1> to vector<4x1xi1>
    %172 = vector.broadcast %171 : vector<4x1xi1> to vector<4x32xi1>
    %173 = arith.select %172, %163, %145 : vector<4x32xi1>, vector<4x32xf32>
    %174 = vector.extract_strided_slice %1 {offsets = [6, 0, 0], sizes = [1, 4, 128], strides = [1, 1, 1]} : vector<8x4x128xf32> to vector<1x4x128xf32>
    %175 = vector.shape_cast %174 : vector<1x4x128xf32> to vector<4x128xf32>
    %176 = arith.truncf %170 : vector<4x32xf32> to vector<4x32xbf16>
    %cst_19 = arith.constant dense<0.000000e+00> : vector<4x128xf32>
    %177 = tpu.matmul %176, %2, %cst_19 {dimension_numbers = #tpu.dot_dimension_numbers<[1], [0], [0], [1], [0, 0, 1, 1], [], []>} : vector<4x32xbf16>, vector<32x128xbf16>, vector<4x128xf32> -> vector<4x128xf32>
    %178 = arith.addf %175, %177 : vector<4x128xf32>
    %179 = arith.negf %178 : vector<4x128xf32>
    %180 = math.exp %179 : vector<4x128xf32>
    %cst_20 = arith.constant 1.000000e+00 : f32
    %181 = vector.broadcast %cst_20 : f32 to vector<4x128xf32>
    %182 = arith.addf %181, %180 : vector<4x128xf32>
    %183 = arith.divf %181, %182 : vector<4x128xf32>
    %184 = math.tanh %178 : vector<4x128xf32>
    %185 = vector.extract_strided_slice %183 {offsets = [0, 0], sizes = [4, 32], strides = [1, 1]} : vector<4x128xf32> to vector<4x32xf32>
    %186 = vector.extract_strided_slice %183 {offsets = [0, 32], sizes = [4, 32], strides = [1, 1]} : vector<4x128xf32> to vector<4x32xf32>
    %187 = vector.extract_strided_slice %183 {offsets = [0, 96], sizes = [4, 32], strides = [1, 1]} : vector<4x128xf32> to vector<4x32xf32>
    %188 = vector.extract_strided_slice %184 {offsets = [0, 64], sizes = [4, 32], strides = [1, 1]} : vector<4x128xf32> to vector<4x32xf32>
    %189 = arith.mulf %186, %173 : vector<4x32xf32>
    %190 = arith.mulf %185, %188 : vector<4x32xf32>
    %191 = arith.addf %189, %190 : vector<4x32xf32>
    %192 = math.tanh %191 : vector<4x32xf32>
    %193 = arith.mulf %187, %192 : vector<4x32xf32>
    %c6_i32 = arith.constant 6 : i32
    %194 = vector.broadcast %c6_i32 : i32 to vector<4x1xi32>
    %195 = arith.cmpi sgt, %3, %194 : vector<4x1xi32>
    %196 = vector.shape_cast %195 : vector<4x1xi1> to vector<4x1xi1>
    %197 = vector.broadcast %196 : vector<4x1xi1> to vector<4x32xi1>
    %198 = arith.select %197, %193, %170 : vector<4x32xi1>, vector<4x32xf32>
    %199 = vector.shape_cast %195 : vector<4x1xi1> to vector<4x1xi1>
    %200 = vector.broadcast %199 : vector<4x1xi1> to vector<4x32xi1>
    %201 = arith.select %200, %191, %173 : vector<4x32xi1>, vector<4x32xf32>
    %202 = vector.extract_strided_slice %1 {offsets = [7, 0, 0], sizes = [1, 4, 128], strides = [1, 1, 1]} : vector<8x4x128xf32> to vector<1x4x128xf32>
    %203 = vector.shape_cast %202 : vector<1x4x128xf32> to vector<4x128xf32>
    %204 = arith.truncf %198 : vector<4x32xf32> to vector<4x32xbf16>
    %cst_21 = arith.constant dense<0.000000e+00> : vector<4x128xf32>
    %205 = tpu.matmul %204, %2, %cst_21 {dimension_numbers = #tpu.dot_dimension_numbers<[1], [0], [0], [1], [0, 0, 1, 1], [], []>} : vector<4x32xbf16>, vector<32x128xbf16>, vector<4x128xf32> -> vector<4x128xf32>
    %206 = arith.addf %203, %205 : vector<4x128xf32>
    %207 = arith.negf %206 : vector<4x128xf32>
    %208 = math.exp %207 : vector<4x128xf32>
    %cst_22 = arith.constant 1.000000e+00 : f32
    %209 = vector.broadcast %cst_22 : f32 to vector<4x128xf32>
    %210 = arith.addf %209, %208 : vector<4x128xf32>
    %211 = arith.divf %209, %210 : vector<4x128xf32>
    %212 = math.tanh %206 : vector<4x128xf32>
    %213 = vector.extract_strided_slice %211 {offsets = [0, 0], sizes = [4, 32], strides = [1, 1]} : vector<4x128xf32> to vector<4x32xf32>
    %214 = vector.extract_strided_slice %211 {offsets = [0, 32], sizes = [4, 32], strides = [1, 1]} : vector<4x128xf32> to vector<4x32xf32>
    %215 = vector.extract_strided_slice %211 {offsets = [0, 96], sizes = [4, 32], strides = [1, 1]} : vector<4x128xf32> to vector<4x32xf32>
    %216 = vector.extract_strided_slice %212 {offsets = [0, 64], sizes = [4, 32], strides = [1, 1]} : vector<4x128xf32> to vector<4x32xf32>
    %217 = arith.mulf %214, %201 : vector<4x32xf32>
    %218 = arith.mulf %213, %216 : vector<4x32xf32>
    %219 = arith.addf %217, %218 : vector<4x32xf32>
    %220 = math.tanh %219 : vector<4x32xf32>
    %221 = arith.mulf %215, %220 : vector<4x32xf32>
    %c7_i32 = arith.constant 7 : i32
    %222 = vector.broadcast %c7_i32 : i32 to vector<4x1xi32>
    %223 = arith.cmpi sgt, %3, %222 : vector<4x1xi32>
    %224 = vector.shape_cast %223 : vector<4x1xi1> to vector<4x1xi1>
    %225 = vector.broadcast %224 : vector<4x1xi1> to vector<4x32xi1>
    %226 = arith.select %225, %221, %198 : vector<4x32xi1>, vector<4x32xf32>
    %c0_23 = arith.constant 0 : index
    %c0_24 = arith.constant 0 : index
    %227 = vector.load %arg4[%c0_23, %c0_24] : memref<1x32xf32, #tpu.memory_space<vmem>>, vector<1x32xf32>
    %228 = vector.broadcast %227 : vector<1x32xf32> to vector<4x32xf32>
    %229 = arith.mulf %226, %228 : vector<4x32xf32>
    %cst_25 = arith.constant dense<0.000000e+00> : vector<4xf32>
    %230 = vector.multi_reduction <add>, %229, %cst_25 [1] : vector<4x32xf32> to vector<4xf32>
    %231 = vector.shape_cast %230 : vector<4xf32> to vector<4x1xf32>
    %c0_26 = arith.constant 0 : index
    %c0_27 = arith.constant 0 : index
    %232 = vector.load %arg5[%c0_26, %c0_27] : memref<1x1xf32, #tpu.memory_space<vmem>>, vector<1x1xf32>
    %233 = vector.broadcast %232 : vector<1x1xf32> to vector<4x1xf32>
    %234 = arith.addf %231, %233 : vector<4x1xf32>
    %235 = arith.negf %234 : vector<4x1xf32>
    %236 = math.exp %235 : vector<4x1xf32>
    %cst_28 = arith.constant 1.000000e+00 : f32
    %237 = vector.broadcast %cst_28 : f32 to vector<4x1xf32>
    %238 = arith.addf %237, %236 : vector<4x1xf32>
    %239 = arith.divf %237, %238 : vector<4x1xf32>
    %c0_29 = arith.constant 0 : index
    %c0_30 = arith.constant 0 : index
    %240 = vector.load %arg6[%c0_29, %c0_30] : memref<4x1xf32, #tpu.memory_space<vmem>>, vector<4x1xf32>
    tpu.vector_store %arg6[%c0_29, %c0_30], %239 {strides = array<i32>} : memref<4x1xf32, #tpu.memory_space<vmem>>, vector<4x1xf32>,
    return
  }
  func.func @transform_0(%arg0: i32) -> (i32, i32, i32) {
    %c0_i32 = arith.constant 0 : i32
    %c0_i32_0 = arith.constant 0 : i32
    %c0_i32_1 = arith.constant 0 : i32
    %c0_i32_2 = arith.constant 0 : i32
    return %c0_i32, %c0_i32_0, %c0_i32_1 : i32, i32, i32
  }
  func.func @transform_1(%arg0: i32) -> (i32, i32) {
    %c0_i32 = arith.constant 0 : i32
    %c0_i32_0 = arith.constant 0 : i32
    %c0_i32_1 = arith.constant 0 : i32
    return %c0_i32, %c0_i32_0 : i32, i32
  }
  func.func @transform_2(%arg0: i32) -> (i32, i32) {
    %c0_i32 = arith.constant 0 : i32
    %c0_i32_0 = arith.constant 0 : i32
    %c0_i32_1 = arith.constant 0 : i32
    return %c0_i32, %c0_i32_0 : i32, i32
  }
  func.func @transform_3(%arg0: i32) -> (i32, i32) {
    %c0_i32 = arith.constant 0 : i32
    %c0_i32_0 = arith.constant 0 : i32
    %c0_i32_1 = arith.constant 0 : i32
    return %c0_i32, %c0_i32_0 : i32, i32
  }
  func.func @transform_4(%arg0: i32) -> (i32, i32) {
    %c0_i32 = arith.constant 0 : i32
    %c0_i32_0 = arith.constant 0 : i32
    %c0_i32_1 = arith.constant 0 : i32
    return %c0_i32, %c0_i32_0 : i32, i32
  }
  func.func @transform_5(%arg0: i32) -> (i32, i32) {
    %c0_i32 = arith.constant 0 : i32
    %c0_i32_0 = arith.constant 0 : i32
    %c0_i32_1 = arith.constant 0 : i32
    return %c0_i32, %c0_i32_0 : i32, i32
  }
}

</mosaic_0001>

<bundles_post_ra>
// kernel: tpu_custom_call.1
= control target key start
LH: loop header
LB: loop body
LE: loop exit
PB: predicated region body
PF: predicated region fallthrough
CT: control target
= control target key end

     0   :  { %s1214_s0 = inlined_call_operand.hbm [shape: bf16[8,4,128], index: 0, kind: input, shape index: {}]   ;;  %s1215_s1 = inlined_call_operand.vmem [shape: s32[4,1], index: 1, kind: input, shape index: {}]   ;;  %s1216_s2 = inlined_call_operand.vmem [shape: bf16[32,128], index: 2, kind: input, shape index: {}]   ;;  %s1217_s3 = inlined_call_operand.vmem [shape: f32[1,32], index: 3, kind: input, shape index: {}]   ;;  %s1218_s4 = inlined_call_operand.<no memory space> [shape: f32[1,1], index: 4, kind: input, shape index: {}]   ;;  %s1219_s5 = inlined_call_operand.vmem [shape: f32[4,1], index: 5, kind: output, shape index: {}]  }
   0x1   :  { %v10_v0 = vstv %s1218_s4 }
   0x2   :  { %11 = vst [vmem:[#allocation2] sm:$0x1] %v10_v0 }
   0x3   :  { %12 = vsyncpa [#allocation4], 0  ;;  %s1018_s20 = smov [#allocation3]   ;;  %s994_s24 = scalar_lea.hbm %s1214_s0, 256 }
   0x4   :  { %s18_s21 = sshll.u32 %s1018_s20, 4  ;;  %p995_p0 = scmp.ne.s32.totalorder %s1214_s0, %s994_s24  ;;  %s19_s21 = int_to_ptr.vmem [resolvable:$true] %s18_s21 }
   0x5   :  { %p998_p1 = scmp.lt.u32.totalorder %s994_s24, %s1214_s0 }
   0x7   :  { %p1000_p2 = pnand %p998_p1, %p995_p0 }
   0x9   :  { %1003 = shalt.err (!%p1000_p2)
}
   0xa   :  { %s1004_s4 = scalar_lea.vmem %s19_s21, 256  ;;  %p1009_p4 = scmp.lt.s32.totalorder %s19_s21, %s19_s21 }
   0xb   :  { %p1005_p3 = scmp.ne.s32.totalorder %s19_s21, %s1004_s4  ;;  %p1010_p5 = scmp.lt.s32.totalorder %s1004_s4, %s1004_s4 }
   0xd   :  { %p1011_p6 = por %p1010_p5, %p1009_p4 }
   0xf   :  { %p1012_p7 = pnand %p1011_p6, %p1005_p3 }
  0x11   :  { %1015 = shalt.err (!%p1012_p7)
}
  0x12   :  { %s1019_s29 = smov 32   ;;  %s1020_s30 = smov 2  }
  0x13   :  { %24 = dma.hbm_to_vmem [thread:$0]  %s1214_s0, 256, %s19_s21, [#allocation4], %s1019_s29, %s1019_s29, %s1020_s30  }
  0x14   :  { %1016 = dma.done.wait [#allocation4], 256  }
  0x15   :  { %1017 = vsyncadd [#allocation4], 4294967040  ;;  %v1021_v1 = vmov 0.0   ;;  %vm1022_vm0 = vmmov 0   ;;  %v1023_v2 = vmov 0   ;;  %v1084_v3 = vld [vmem:[%s1216_s2] sm:$0xff]  }
  0x16   :  { %850 = vmatprep.subr.bf16.mxu0 %v1021_v1  ;;  %854 = vmatprep.mubr.msk.bf16.mxu0 %vm1022_vm0, %v1021_v1  ;;  %v1090_v4 = vld [vmem:[%s1216_s2 + $0x8] sm:$0xff]   ;;  %v37_v5 = vld [vmem:[#allocation3] sm:$0x3]  ;;  %s1024_s2 = smov 64   ;;  %s1025_s13 = smov 96   ;;  %vm70_vm3 = vcmask 261120  }
  0x17   :  { %922 = vset.pattern.permute.xlu1 %v1023_v2  ;;  %858 = vmatprep.subr.bf16.mxu1 %v1021_v1  ;;  %v45_v6 = vunpack.c.l.bf16 %v37_v5  ;;  %v1111_v22 = vld [vmem:[%s1215_s1] sm:$0xf]  ;;  %v39_v61 = vld [vmem:[#allocation3 + $0x4] sm:$0x3] }
  0x18   :  { %862 = vmatprep.mubr.msk.bf16.mxu1 %vm1022_vm0, %v1021_v1  ;;  %923 = vset.pattern.permute.xlu0 %v1023_v2  ;;  %vm139_vm1 = vcmp.gt.s32.totalorder %v1111_v22, 0  ;;  %v38_v33 = vld [vmem:[#allocation3 + $0x2] sm:$0x3]  ;;  %vm228_vm4 = vcmp.gt.s32.totalorder %v1111_v22, 1  ;;  %v47_v62 = vunpack.c.l.bf16 %v39_v61  ;;  %vm317_vm6 = vcmp.gt.s32.totalorder %v1111_v22, 2 }
  0x19   :  { %851 = vmatpush3.bf16.msra.mxu0 %v1084_v3  ;;  %859 = vmatpush3.bf16.msra.mxu1 %v1084_v3  ;;  %v140_v24 = vsel %vm139_vm1, 1, %v1023_v2  ;;  %v46_v34 = vunpack.c.l.bf16 %v38_v33  ;;  %v229_v47 = vsel %vm228_vm4, 1, %v1023_v2  ;;  %vm406_vm8 = vcmp.gt.s32.totalorder %v1111_v22, 3 }
  0x1a   :  { %852 = vmatprep.subr.bf16.mxu0 %v1021_v1  ;;  %860 = vmatprep.subr.bf16.mxu1 %v1021_v1  ;;  %vm495_vm10 = vcmp.gt.s32.totalorder %v1111_v22, 4  ;;  %vm584_vm12 = vcmp.gt.s32.totalorder %v1111_v22, 5  ;;  %vm673_vm14 = vcmp.gt.s32.totalorder %v1111_v22, 6 }
  0x1d   :  { %853 = vmatpush3.bf16.msra.mxu0 %v1090_v4  ;;  %861 = vmatpush3.bf16.msra.mxu1 %v1090_v4 }
  0x1e   :  { %866 = vmatprep.subr.bf16.mxu0 %v1021_v1  ;;  %874 = vmatprep.subr.bf16.mxu1 %v1021_v1 }
  0x20   :  { %855 = vmatmul.mubr.bf16.vlgmr.msra.gmra.mrb[0].mxu0 %v1023_v2 }
  0x21   :  { %867 = vmatpush3.bf16.msra.mxu0 %v1084_v3  ;;  %870 = vmatprep.mubr.msk.bf16.mxu0 %vm1022_vm0, %v1021_v1 }
  0x22   :  { %868 = vmatprep.subr.bf16.mxu0 %v1021_v1 }
  0x25   :  { %869 = vmatpush3.bf16.msra.mxu0 %v1090_v4 }
  0x26   :  { %882 = vmatprep.subr.bf16.mxu0 %v1021_v1 }
  0xf3   :  { %v108_v7 = vpop.f32.mrb[0].mxu0 }
  0xf4   :  { %v114_v8 = vadd.f32 %v108_v7, %v45_v6  ;;  %v856_v9 = vpop.f32.mrb[1].mxu0 }
  0xf5   :  { %v111_v10 = vpop.f32.mrb[2].mxu0 }
  0xf6   :  { %926 = vtanh.f32 %v114_v8  ;;  %v857_v11 = vpop.f32.mrb[3].mxu0  ;;  %v808_v13 = vmul.f32 -1.442695, %v114_v8 }
  0xf8   :  { %928 = vpow2.f32 %v808_v13 }
 0x100   :  { %v927_v12 = vpop.eup %926 }
 0x101   :  { %124 = vrot.lane.b32.xlu0 %v927_v12, %s1024_s2 }
 0x102   :  { %v929_v14 = vpop.eup %928 }
 0x103   :  { %v118_v15 = vadd.f32 1.0, %v929_v14 }
 0x105   :  { %930 = vrcp.f32 %v118_v15  ;;  %v318_v15 = vsel %vm317_vm6, 1, %v1023_v2 }
 0x10f   :  { %v931_v16 = vpop.eup %930 }
 0x110   :  { %v122_v19 = vmul.f32 0.0, %v931_v16 }
 0x173   :  { %v125_v17 = vpop.permute.xlu0 %124 }
 0x174   :  { %v127_v18 = vmul.f32 %v931_v16, %v125_v17 }
 0x176   :  { %129 = vrot.lane.b32.xlu0 %v127_v18, %s1019_s29 }
 0x1e8   :  { %v130_v20 = vpop.permute.xlu0 %129 }
 0x1e9   :  { %v132_v21 = vadd.f32 %v130_v20, %v122_v19 }
 0x1eb   :  { %932 = vtanh.f32 %v132_v21 }
 0x1f5   :  { %v933_v23 = vpop.eup %932 }
 0x1f6   :  { %135 = vrot.lane.b32.xlu1 %v933_v23, %s1024_s2 }
 0x1fa   :  { %142 = vperm.xlu1 %922, %v140_v24  }
 0x1fe   :  { %151 = vrot.lane.b32.xlu1 %v132_v21, %s1025_s13 }
 0x268   :  { %v136_v25 = vpop.permute.xlu1 %135 }
 0x269   :  { %v138_v26 = vmul.f32 %v931_v16, %v136_v25 }
 0x26b   :  { %146 = vrot.lane.b32.xlu0 %v138_v26, %s1019_s29 }
 0x279   :  { %v143_v27 = vpop.permute.xlu1 %142 }
 0x27a   :  { %vm144_vm2 = vcmp.eq.s32.totalorder %v143_v27, 1 }
 0x27d   :  { %v152_v28 = vpop.permute.xlu1 %151 }
 0x27e   :  { %v154_v29 = vsel %vm144_vm2, %v152_v28, 0.0 }
 0x27f   :  { %208 = vrot.lane.b32.xlu1 %v154_v29, %s1019_s29 }
 0x2dd   :  { %v147_v30 = vpop.permute.xlu0 %146 }
 0x2de   :  { %v149_v31 = vsel %vm144_vm2, %v147_v30, 0.0  ;;  %v40_v30 = vld [vmem:[#allocation3 + $0x6] sm:$0x3]  ;;  %vm781_vm2 = vcmask 257024  }
 0x2df   :  { %v155_v32 = vpack.c.bf16 %v149_v31, %v149_v31 }
 0x2e1   :  { %863 = vmatmul.mubr.msk.bf16.vlgmr.msra.gmra.mrb[0].mxu1 %vm70_vm3, %v155_v32 }
 0x2e2   :  { %875 = vmatpush3.bf16.msra.mxu1 %v1084_v3  ;;  %878 = vmatprep.mubr.msk.bf16.mxu1 %vm1022_vm0, %v1021_v1 }
 0x2e3   :  { %876 = vmatprep.subr.bf16.mxu1 %v1021_v1 }
 0x2e6   :  { %877 = vmatpush3.bf16.msra.mxu1 %v1090_v4 }
 0x2e7   :  { %890 = vmatprep.subr.bf16.mxu1 %v1021_v1 }
 0x2f1   :  { %v209_v48 = vpop.permute.xlu1 %208 }
 0x3b4   :  { %v193_v35 = vpop.f32.mrb[0].mxu1 }
 0x3b5   :  { %v199_v36 = vadd.f32 %v193_v35, %v46_v34  ;;  %v864_v37 = vpop.f32.mrb[1].mxu1 }
 0x3b6   :  { %v196_v38 = vpop.f32.mrb[2].mxu1 }
 0x3b7   :  { %934 = vtanh.f32 %v199_v36  ;;  %v865_v39 = vpop.f32.mrb[3].mxu1  ;;  %v810_v41 = vmul.f32 -1.442695, %v199_v36 }
 0x3b9   :  { %936 = vpow2.f32 %v810_v41 }
 0x3c1   :  { %v935_v40 = vpop.eup %934 }
 0x3c2   :  { %213 = vrot.lane.b32.xlu0 %v935_v40, %s1024_s2 }
 0x3c3   :  { %v937_v42 = vpop.eup %936 }
 0x3c4   :  { %v203_v43 = vadd.f32 1.0, %v937_v42 }
 0x3c6   :  { %938 = vrcp.f32 %v203_v43 }
 0x3d0   :  { %v939_v44 = vpop.eup %938 }
 0x3d1   :  { %v211_v49 = vmul.f32 %v939_v44, %v209_v48 }
 0x434   :  { %v214_v45 = vpop.permute.xlu0 %213 }
 0x435   :  { %v216_v46 = vmul.f32 %v939_v44, %v214_v45 }
 0x437   :  { %218 = vrot.lane.b32.xlu0 %v216_v46, %s1019_s29 }
 0x43b   :  { %231 = vperm.xlu0 %923, %v229_v47  }
 0x4a9   :  { %v219_v50 = vpop.permute.xlu0 %218 }
 0x4aa   :  { %v221_v51 = vadd.f32 %v219_v50, %v211_v49 }
 0x4ac   :  { %940 = vtanh.f32 %v221_v51 }
 0x4b6   :  { %v941_v52 = vpop.eup %940 }
 0x4b7   :  { %224 = vrot.lane.b32.xlu1 %v941_v52, %s1024_s2 }
 0x4ba   :  { %v232_v55 = vpop.permute.xlu0 %231 }
 0x4bb   :  { %vm233_vm5 = vcmp.eq.s32.totalorder %v232_v55, 1 }
 0x529   :  { %v225_v53 = vpop.permute.xlu1 %224 }
 0x52a   :  { %v227_v54 = vmul.f32 %v939_v44, %v225_v53  ;;  %v407_v44 = vsel %vm406_vm8, 1, %v1023_v2 }
 0x52c   :  { %235 = vrot.lane.b32.xlu1 %v227_v54, %s1019_s29 }
 0x530   :  { %240 = vrot.lane.b32.xlu1 %v221_v51, %s1025_s13 }
 0x59e   :  { %v236_v56 = vpop.permute.xlu1 %235 }
 0x59f   :  { %v238_v57 = vsel %vm233_vm5, %v236_v56, %v149_v31  ;;  %v48_v31 = vunpack.c.l.bf16 %v40_v30 }
 0x5a0   :  { %v244_v58 = vpack.c.bf16 %v238_v57, %v238_v57 }
 0x5a2   :  { %871 = vmatmul.mubr.msk.bf16.vlgmr.msra.gmra.mrb[4].mxu0 %vm70_vm3, %v244_v58  ;;  %v241_v59 = vpop.permute.xlu1 %240  ;;  %v41_v58 = vld [vmem:[#allocation3 + $0x8] sm:$0x3] }
 0x5a3   :  { %v243_v60 = vsel %vm233_vm5, %v241_v59, %v154_v29  ;;  %883 = vmatpush3.bf16.msra.mxu0 %v1084_v3  ;;  %886 = vmatprep.mubr.msk.bf16.mxu0 %vm1022_vm0, %v1021_v1  ;;  %v49_v59 = vunpack.c.l.bf16 %v41_v58 }
 0x5a4   :  { %297 = vrot.lane.b32.xlu1 %v243_v60, %s1019_s29  ;;  %884 = vmatprep.subr.bf16.mxu0 %v1021_v1 }
 0x5a7   :  { %885 = vmatpush3.bf16.msra.mxu0 %v1090_v4 }
 0x5a8   :  { %898 = vmatprep.subr.bf16.mxu0 %v1021_v1 }
 0x616   :  { %v298_v16 = vpop.permute.xlu1 %297 }
 0x675   :  { %v282_v63 = vpop.f32.mrb[4].mxu0 }
 0x676   :  { %v288_v0 = vadd.f32 %v282_v63, %v47_v62  ;;  %v872_v5 = vpop.f32.mrb[5].mxu0 }
 0x677   :  { %v285_v6 = vpop.f32.mrb[6].mxu0 }
 0x678   :  { %942 = vtanh.f32 %v288_v0  ;;  %v873_v7 = vpop.f32.mrb[7].mxu0  ;;  %v812_v9 = vmul.f32 -1.442695, %v288_v0 }
 0x67a   :  { %944 = vpow2.f32 %v812_v9 }
 0x682   :  { %v943_v8 = vpop.eup %942 }
 0x683   :  { %302 = vrot.lane.b32.xlu0 %v943_v8, %s1024_s2 }
 0x684   :  { %v945_v10 = vpop.eup %944 }
 0x685   :  { %v292_v11 = vadd.f32 1.0, %v945_v10 }
 0x687   :  { %946 = vrcp.f32 %v292_v11 }
 0x691   :  { %v947_v12 = vpop.eup %946 }
 0x692   :  { %v300_v17 = vmul.f32 %v947_v12, %v298_v16 }
 0x6f5   :  { %v303_v13 = vpop.permute.xlu0 %302 }
 0x6f6   :  { %v305_v14 = vmul.f32 %v947_v12, %v303_v13 }
 0x6f8   :  { %307 = vrot.lane.b32.xlu0 %v305_v14, %s1019_s29 }
 0x6fc   :  { %320 = vperm.xlu0 %923, %v318_v15  }
 0x76a   :  { %v308_v18 = vpop.permute.xlu0 %307 }
 0x76b   :  { %v310_v19 = vadd.f32 %v308_v18, %v300_v17 }
 0x76d   :  { %948 = vtanh.f32 %v310_v19  ;;  %329 = vrot.lane.b32.xlu0 %v310_v19, %s1025_s13 }
 0x777   :  { %v949_v20 = vpop.eup %948 }
 0x778   :  { %313 = vrot.lane.b32.xlu1 %v949_v20, %s1024_s2 }
 0x77b   :  { %v321_v21 = vpop.permute.xlu0 %320 }
 0x77c   :  { %vm322_vm7 = vcmp.eq.s32.totalorder %v321_v21, 1 }
 0x7df   :  { %v330_v23 = vpop.permute.xlu0 %329 }
 0x7e0   :  { %v332_v24 = vsel %vm322_vm7, %v330_v23, %v243_v60 }
 0x7e1   :  { %386 = vrot.lane.b32.xlu0 %v332_v24, %s1019_s29 }
 0x7ea   :  { %v314_v25 = vpop.permute.xlu1 %313 }
 0x7eb   :  { %v316_v26 = vmul.f32 %v947_v12, %v314_v25  ;;  %v496_v12 = vsel %vm495_vm10, 1, %v1023_v2 }
 0x7ed   :  { %324 = vrot.lane.b32.xlu1 %v316_v26, %s1019_s29 }
 0x853   :  { %v387_v45 = vpop.permute.xlu0 %386 }
 0x85f   :  { %v325_v27 = vpop.permute.xlu1 %324 }
 0x860   :  { %v327_v28 = vsel %vm322_vm7, %v325_v27, %v238_v57  ;;  %v42_v27 = vld [vmem:[#allocation3 + $0xa] sm:$0x3] }
 0x861   :  { %v333_v29 = vpack.c.bf16 %v327_v28, %v327_v28 }
 0x863   :  { %879 = vmatmul.mubr.msk.bf16.vlgmr.msra.gmra.mrb[4].mxu1 %vm70_vm3, %v333_v29 }
 0x864   :  { %891 = vmatpush3.bf16.msra.mxu1 %v1084_v3  ;;  %894 = vmatprep.mubr.msk.bf16.mxu1 %vm1022_vm0, %v1021_v1 }
 0x865   :  { %892 = vmatprep.subr.bf16.mxu1 %v1021_v1 }
 0x868   :  { %893 = vmatpush3.bf16.msra.mxu1 %v1090_v4 }
 0x869   :  { %906 = vmatprep.subr.bf16.mxu1 %v1021_v1 }
 0x936   :  { %v371_v32 = vpop.f32.mrb[4].mxu1 }
 0x937   :  { %v377_v33 = vadd.f32 %v371_v32, %v48_v31  ;;  %v880_v34 = vpop.f32.mrb[5].mxu1 }
 0x938   :  { %v374_v35 = vpop.f32.mrb[6].mxu1 }
 0x939   :  { %950 = vtanh.f32 %v377_v33  ;;  %v881_v36 = vpop.f32.mrb[7].mxu1  ;;  %v814_v38 = vmul.f32 -1.442695, %v377_v33 }
 0x93b   :  { %952 = vpow2.f32 %v814_v38 }
 0x943   :  { %v951_v37 = vpop.eup %950 }
 0x944   :  { %391 = vrot.lane.b32.xlu1 %v951_v37, %s1024_s2 }
 0x945   :  { %v953_v39 = vpop.eup %952 }
 0x946   :  { %v381_v40 = vadd.f32 1.0, %v953_v39 }
 0x948   :  { %954 = vrcp.f32 %v381_v40 }
 0x952   :  { %v955_v41 = vpop.eup %954 }
 0x953   :  { %v389_v46 = vmul.f32 %v955_v41, %v387_v45 }
 0x9b6   :  { %v392_v42 = vpop.permute.xlu1 %391 }
 0x9b7   :  { %v394_v43 = vmul.f32 %v955_v41, %v392_v42 }
 0x9b9   :  { %396 = vrot.lane.b32.xlu1 %v394_v43, %s1019_s29 }
 0x9bd   :  { %409 = vperm.xlu1 %922, %v407_v44  }
 0xa2b   :  { %v397_v47 = vpop.permute.xlu1 %396 }
 0xa2c   :  { %v399_v48 = vadd.f32 %v397_v47, %v389_v46 }
 0xa2e   :  { %956 = vtanh.f32 %v399_v48  ;;  %418 = vrot.lane.b32.xlu1 %v399_v48, %s1025_s13 }
 0xa38   :  { %v957_v49 = vpop.eup %956 }
 0xa39   :  { %402 = vrot.lane.b32.xlu0 %v957_v49, %s1024_s2 }
 0xa3c   :  { %v410_v50 = vpop.permute.xlu1 %409 }
 0xa3d   :  { %vm411_vm9 = vcmp.eq.s32.totalorder %v410_v50, 1 }
 0xaa0   :  { %v419_v51 = vpop.permute.xlu1 %418 }
 0xaa1   :  { %v421_v52 = vsel %vm411_vm9, %v419_v51, %v332_v24 }
 0xaa2   :  { %475 = vrot.lane.b32.xlu1 %v421_v52, %s1019_s29 }
 0xaab   :  { %v403_v53 = vpop.permute.xlu0 %402 }
 0xaac   :  { %v405_v54 = vmul.f32 %v955_v41, %v403_v53 }
 0xaae   :  { %413 = vrot.lane.b32.xlu0 %v405_v54, %s1019_s29 }
 0xb14   :  { %v476_v13 = vpop.permute.xlu1 %475 }
 0xb20   :  { %v414_v55 = vpop.permute.xlu0 %413 }
 0xb21   :  { %v416_v56 = vsel %vm411_vm9, %v414_v55, %v327_v28  ;;  %v50_v28 = vunpack.c.l.bf16 %v42_v27 }
 0xb22   :  { %v422_v57 = vpack.c.bf16 %v416_v56, %v416_v56 }
 0xb24   :  { %887 = vmatmul.mubr.msk.bf16.vlgmr.msra.gmra.mrb[8].mxu0 %vm70_vm3, %v422_v57 }
 0xb25   :  { %899 = vmatpush3.bf16.msra.mxu0 %v1084_v3  ;;  %902 = vmatprep.mubr.msk.bf16.mxu0 %vm1022_vm0, %v1021_v1 }
 0xb26   :  { %900 = vmatprep.subr.bf16.mxu0 %v1021_v1 }
 0xb29   :  { %901 = vmatpush3.bf16.msra.mxu0 %v1090_v4 }
 0xbf7   :  { %v460_v60 = vpop.f32.mrb[8].mxu0 }
 0xbf8   :  { %v466_v61 = vadd.f32 %v460_v60, %v49_v59  ;;  %v888_v62 = vpop.f32.mrb[9].mxu0 }
 0xbf9   :  { %v463_v63 = vpop.f32.mrb[10].mxu0 }
 0xbfa   :  { %958 = vtanh.f32 %v466_v61  ;;  %v889_v0 = vpop.f32.mrb[11].mxu0  ;;  %v816_v6 = vmul.f32 -1.442695, %v466_v61 }
 0xbfc   :  { %960 = vpow2.f32 %v816_v6  ;;  %v674_v6 = vsel %vm673_vm14, 1, %v1023_v2 }
 0xc04   :  { %v959_v5 = vpop.eup %958 }
 0xc05   :  { %480 = vrot.lane.b32.xlu0 %v959_v5, %s1024_s2 }
 0xc06   :  { %v961_v7 = vpop.eup %960 }
 0xc07   :  { %v470_v8 = vadd.f32 1.0, %v961_v7 }
 0xc09   :  { %962 = vrcp.f32 %v470_v8 }
 0xc13   :  { %v963_v9 = vpop.eup %962 }
 0xc14   :  { %v478_v14 = vmul.f32 %v963_v9, %v476_v13 }
 0xc77   :  { %v481_v10 = vpop.permute.xlu0 %480 }
 0xc78   :  { %v483_v11 = vmul.f32 %v963_v9, %v481_v10 }
 0xc7a   :  { %485 = vrot.lane.b32.xlu0 %v483_v11, %s1019_s29 }
 0xc7e   :  { %498 = vperm.xlu0 %923, %v496_v12  }
 0xcec   :  { %v486_v15 = vpop.permute.xlu0 %485 }
 0xced   :  { %v488_v16 = vadd.f32 %v486_v15, %v478_v14 }
 0xcef   :  { %964 = vtanh.f32 %v488_v16  ;;  %507 = vrot.lane.b32.xlu0 %v488_v16, %s1025_s13 }
 0xcf9   :  { %v965_v17 = vpop.eup %964 }
 0xcfa   :  { %491 = vrot.lane.b32.xlu1 %v965_v17, %s1024_s2 }
 0xcfd   :  { %v499_v18 = vpop.permute.xlu0 %498 }
 0xcfe   :  { %vm500_vm11 = vcmp.eq.s32.totalorder %v499_v18, 1 }
 0xd61   :  { %v508_v19 = vpop.permute.xlu0 %507 }
 0xd62   :  { %v510_v20 = vsel %vm500_vm11, %v508_v19, %v421_v52  ;;  %v43_v52 = vld [vmem:[#allocation3 + $0xc] sm:$0x3] }
 0xd63   :  { %564 = vrot.lane.b32.xlu0 %v510_v20, %s1019_s29  ;;  %v51_v53 = vunpack.c.l.bf16 %v43_v52 }
 0xd6c   :  { %v492_v21 = vpop.permute.xlu1 %491 }
 0xd6d   :  { %v494_v23 = vmul.f32 %v963_v9, %v492_v21 }
 0xd6f   :  { %502 = vrot.lane.b32.xlu1 %v494_v23, %s1019_s29 }
 0xdd5   :  { %v565_v39 = vpop.permute.xlu0 %564 }
 0xde1   :  { %v503_v24 = vpop.permute.xlu1 %502 }
 0xde2   :  { %v505_v25 = vsel %vm500_vm11, %v503_v24, %v416_v56 }
 0xde3   :  { %v511_v26 = vpack.c.bf16 %v505_v25, %v505_v25 }
 0xde5   :  { %895 = vmatmul.mubr.msk.bf16.vlgmr.msra.gmra.mrb[8].mxu1 %vm70_vm3, %v511_v26 }
 0xde6   :  { %907 = vmatpush3.bf16.msra.mxu1 %v1084_v3  ;;  %910 = vmatprep.mubr.msk.bf16.mxu1 %vm1022_vm0, %v1021_v1  ;;  %vm762_vm0 = vcmp.gt.s32.totalorder %v1111_v22, 7  ;;  %v823_v22 = vld [vmem:[%s1217_s3] ss:$0 sm:$0xff] }
 0xde7   :  { %908 = vmatprep.subr.bf16.mxu1 %v1021_v1 }
 0xdea   :  { %909 = vmatpush3.bf16.msra.mxu1 %v1090_v4  ;;  %v585_v4 = vsel %vm584_vm12, 1, %v1023_v2 }
 0xeb8   :  { %v549_v29 = vpop.f32.mrb[8].mxu1 }
 0xeb9   :  { %v555_v30 = vadd.f32 %v549_v29, %v50_v28  ;;  %v896_v31 = vpop.f32.mrb[9].mxu1 }
 0xeba   :  { %v552_v32 = vpop.f32.mrb[10].mxu1 }
 0xebb   :  { %966 = vtanh.f32 %v555_v30  ;;  %v897_v33 = vpop.f32.mrb[11].mxu1  ;;  %v818_v35 = vmul.f32 -1.442695, %v555_v30 }
 0xebd   :  { %968 = vpow2.f32 %v818_v35  ;;  %v763_v35 = vsel %vm762_vm0, 1, %v1023_v2 }
 0xec5   :  { %v967_v34 = vpop.eup %966 }
 0xec6   :  { %569 = vrot.lane.b32.xlu1 %v967_v34, %s1024_s2 }
 0xec7   :  { %v969_v3 = vpop.eup %968 }
 0xec8   :  { %v559_v36 = vadd.f32 1.0, %v969_v3 }
 0xeca   :  { %970 = vrcp.f32 %v559_v36 }
 0xed4   :  { %v971_v37 = vpop.eup %970 }
 0xed5   :  { %v567_v40 = vmul.f32 %v971_v37, %v565_v39 }
 0xf38   :  { %v570_v1 = vpop.permute.xlu1 %569 }
 0xf39   :  { %v572_v38 = vmul.f32 %v971_v37, %v570_v1 }
 0xf3b   :  { %574 = vrot.lane.b32.xlu1 %v572_v38, %s1019_s29 }
 0xf3f   :  { %587 = vperm.xlu1 %922, %v585_v4  }
 0xfad   :  { %v575_v41 = vpop.permute.xlu1 %574 }
 0xfae   :  { %v577_v42 = vadd.f32 %v575_v41, %v567_v40 }
 0xfb0   :  { %972 = vtanh.f32 %v577_v42  ;;  %596 = vrot.lane.b32.xlu1 %v577_v42, %s1025_s13 }
 0xfba   :  { %v973_v43 = vpop.eup %972 }
 0xfbb   :  { %580 = vrot.lane.b32.xlu0 %v973_v43, %s1024_s2 }
 0xfbe   :  { %v588_v44 = vpop.permute.xlu1 %587 }
 0xfbf   :  { %vm589_vm13 = vcmp.eq.s32.totalorder %v588_v44, 1  ;;  %v824_v44 = vld [vmem:[#allocation2] ss:$0 sm:$0xff] }
0x1022   :  { %v597_v45 = vpop.permute.xlu1 %596 }
0x1023   :  { %v599_v46 = vsel %vm589_vm13, %v597_v45, %v510_v20  ;;  %v44_v20 = vld [vmem:[#allocation3 + $0xe] sm:$0x3] }
0x1024   :  { %653 = vrot.lane.b32.xlu1 %v599_v46, %s1019_s29  ;;  %v52_v21 = vunpack.c.l.bf16 %v44_v20 }
0x102d   :  { %v581_v47 = vpop.permute.xlu0 %580 }
0x102e   :  { %v583_v48 = vmul.f32 %v971_v37, %v581_v47 }
0x1030   :  { %591 = vrot.lane.b32.xlu0 %v583_v48, %s1019_s29 }
0x1096   :  { %v654_v7 = vpop.permute.xlu1 %653 }
0x10a2   :  { %v592_v49 = vpop.permute.xlu0 %591 }
0x10a3   :  { %v594_v50 = vsel %vm589_vm13, %v592_v49, %v505_v25 }
0x10a4   :  { %v600_v51 = vpack.c.bf16 %v594_v50, %v594_v50 }
0x10a6   :  { %903 = vmatmul.mubr.msk.bf16.vlgmr.msra.gmra.mrb[12].mxu0 %vm70_vm3, %v600_v51 }
0x1179   :  { %v638_v54 = vpop.f32.mrb[12].mxu0 }
0x117a   :  { %v644_v55 = vadd.f32 %v638_v54, %v51_v53  ;;  %v904_v56 = vpop.f32.mrb[13].mxu0 }
0x117b   :  { %v641_v57 = vpop.f32.mrb[14].mxu0 }
0x117c   :  { %974 = vtanh.f32 %v644_v55  ;;  %v905_v58 = vpop.f32.mrb[15].mxu0  ;;  %v820_v60 = vmul.f32 -1.442695, %v644_v55 }
0x117e   :  { %976 = vpow2.f32 %v820_v60 }
0x1186   :  { %v975_v59 = vpop.eup %974 }
0x1187   :  { %658 = vrot.lane.b32.xlu0 %v975_v59, %s1024_s2 }
0x1188   :  { %v977_v61 = vpop.eup %976 }
0x1189   :  { %v648_v62 = vadd.f32 1.0, %v977_v61 }
0x118b   :  { %978 = vrcp.f32 %v648_v62 }
0x1195   :  { %v979_v63 = vpop.eup %978 }
0x1196   :  { %v656_v8 = vmul.f32 %v979_v63, %v654_v7 }
0x11f9   :  { %v659_v0 = vpop.permute.xlu0 %658 }
0x11fa   :  { %v661_v5 = vmul.f32 %v979_v63, %v659_v0 }
0x11fc   :  { %663 = vrot.lane.b32.xlu0 %v661_v5, %s1019_s29 }
0x1200   :  { %676 = vperm.xlu0 %923, %v674_v6  }
0x126e   :  { %v664_v9 = vpop.permute.xlu0 %663 }
0x126f   :  { %v666_v10 = vadd.f32 %v664_v9, %v656_v8 }
0x1271   :  { %980 = vtanh.f32 %v666_v10  ;;  %685 = vrot.lane.b32.xlu0 %v666_v10, %s1025_s13 }
0x127b   :  { %v981_v11 = vpop.eup %980 }
0x127c   :  { %669 = vrot.lane.b32.xlu1 %v981_v11, %s1024_s2 }
0x127f   :  { %v677_v12 = vpop.permute.xlu0 %676 }
0x1280   :  { %vm678_vm15 = vcmp.eq.s32.totalorder %v677_v12, 1 }
0x12e3   :  { %v686_v13 = vpop.permute.xlu0 %685 }
0x12e4   :  { %v688_v14 = vsel %vm678_vm15, %v686_v13, %v599_v46 }
0x12e5   :  { %742 = vrot.lane.b32.xlu0 %v688_v14, %s1019_s29 }
0x12ee   :  { %v670_v15 = vpop.permute.xlu1 %669 }
0x12ef   :  { %v672_v16 = vmul.f32 %v979_v63, %v670_v15 }
0x12f1   :  { %680 = vrot.lane.b32.xlu1 %v672_v16, %s1019_s29 }
0x1357   :  { %v743_v3 = vpop.permute.xlu0 %742 }
0x1363   :  { %v681_v17 = vpop.permute.xlu1 %680 }
0x1364   :  { %v683_v18 = vsel %vm678_vm15, %v681_v17, %v594_v50 }
0x1365   :  { %v689_v19 = vpack.c.bf16 %v683_v18, %v683_v18 }
0x1367   :  { %911 = vmatmul.mubr.msk.bf16.vlgmr.msra.gmra.mrb[12].mxu1 %vm70_vm3, %v689_v19  ;;  %vm799_vm3 = vcmask 3072  }
0x143a   :  { %v727_v23 = vpop.f32.mrb[12].mxu1 }
0x143b   :  { %v733_v24 = vadd.f32 %v727_v23, %v52_v21  ;;  %v912_v25 = vpop.f32.mrb[13].mxu1 }
0x143c   :  { %v730_v26 = vpop.f32.mrb[14].mxu1 }
0x143d   :  { %982 = vtanh.f32 %v733_v24  ;;  %v913_v27 = vpop.f32.mrb[15].mxu1  ;;  %v822_v29 = vmul.f32 -1.442695, %v733_v24 }
0x143f   :  { %984 = vpow2.f32 %v822_v29 }
0x1447   :  { %v983_v28 = vpop.eup %982 }
0x1448   :  { %747 = vrot.lane.b32.xlu1 %v983_v28, %s1024_s2 }
0x1449   :  { %v985_v30 = vpop.eup %984 }
0x144a   :  { %v737_v31 = vadd.f32 1.0, %v985_v30 }
0x144c   :  { %986 = vrcp.f32 %v737_v31 }
0x1456   :  { %v987_v32 = vpop.eup %986 }
0x1457   :  { %v745_v36 = vmul.f32 %v987_v32, %v743_v3 }
0x14ba   :  { %v748_v33 = vpop.permute.xlu1 %747 }
0x14bb   :  { %v750_v34 = vmul.f32 %v987_v32, %v748_v33 }
0x14bd   :  { %752 = vrot.lane.b32.xlu1 %v750_v34, %s1019_s29 }
0x14c1   :  { %765 = vperm.xlu1 %922, %v763_v35  }
0x152f   :  { %v753_v37 = vpop.permute.xlu1 %752 }
0x1530   :  { %v755_v1 = vadd.f32 %v753_v37, %v745_v36 }
0x1532   :  { %988 = vtanh.f32 %v755_v1 }
0x153c   :  { %v989_v38 = vpop.eup %988 }
0x153d   :  { %758 = vrot.lane.b32.xlu0 %v989_v38, %s1024_s2 }
0x1540   :  { %v766_v40 = vpop.permute.xlu1 %765 }
0x1541   :  { %vm767_vm1 = vcmp.eq.s32.totalorder %v766_v40, 1 }
0x15af   :  { %v759_v4 = vpop.permute.xlu0 %758 }
0x15b0   :  { %v761_v39 = vmul.f32 %v987_v32, %v759_v4 }
0x15b2   :  { %769 = vrot.lane.b32.xlu0 %v761_v39, %s1019_s29 }
0x1624   :  { %v770_v2 = vpop.permute.xlu0 %769 }
0x1625   :  { %v772_v41 = vsel %vm767_vm1, %v770_v2, %v683_v18 }
0x1626   :  { %v780_v42 = vmul.f32 %v823_v22, %v772_v41 }
0x1628   :  { %v782_v43 = vsel %vm781_vm2, %v780_v42, 0.0 }
0x1629   :  { %783 = vadd.xlane.f32.xlu1 %v782_v43 }
0x16b6   :  { %v784_v45 = vpop.xlane.xlu1 %783 }
0x16b7   :  { %v792_v46 = vadd.f32 %v824_v44, %v784_v45 }
0x16b9   :  { %v825_v47 = vmul.f32 -1.442695, %v792_v46 }
0x16bb   :  { %990 = vpow2.f32 %v825_v47 }
0x16c5   :  { %v991_v48 = vpop.eup %990 }
0x16c6   :  { %v796_v49 = vadd.f32 1.0, %v991_v48 }
0x16c8   :  { %992 = vrcp.f32 %v796_v49 }
0x16d2   :  { %v993_v50 = vpop.eup %992 }
0x16d3   :  { %800 = vst.msk [vmem:[%s1219_s5] sm:$0xf] %vm799_vm3, %v993_v50 }
0x16d4   :  { %805 = vsyncpa [#allocation4], 1 }

</bundles_post_ra>
